<compile_context>
chip_gen: v6e
topology: v6e:2x2x1
jax: 0.10.0
libtpu: 0.0.40
codegen_flags: <defaults>
</compile_context>

<pallas_src>
import functools

import jax
import jax.numpy as jnp
from jax.experimental import pallas as pl
from jax.experimental.pallas import tpu as pltpu


def _round_up(x: int, m: int) -> int:
    return (x + m - 1) // m * m


def _q_kernel(state_ref, action_ref, pk_ref, out_ref, *, S, A, H, offs):
    """One batch tile of q(sa) = W3^T relu(W2^T relu(W1^T sa + b1) + b2) + b3."""
    o_b1, o_w2, o_b2, o_w3, o_b3 = offs

    xs = state_ref[...]                       # (tb, S)
    xa = action_ref[...]                      # (tb, A)

    # Static slices into the packed parameter slab (compile-time offsets).
    w1s = pk_ref[0:S, :]                      # (S, H)
    w1a = pk_ref[S:S + A, :]                  # (A, H)
    b1 = pk_ref[o_b1:o_b1 + 1, :]             # (1, H)
    w2 = pk_ref[o_w2:o_w2 + H, :]             # (H, H)
    b2 = pk_ref[o_b2:o_b2 + 1, :]             # (1, H)
    w3 = pk_ref[o_w3:o_w3 + 1, :]             # (1, H)   last-layer weight, transposed
    b3 = pk_ref[o_b3:o_b3 + 1, 0:1]           # (1, 1)

    # Layer 1 (concat-free): state @ W1[:S] + action @ W1[S:].
    h = jnp.dot(xs, w1s, preferred_element_type=jnp.float32)
    h = h + jnp.dot(xa, w1a, preferred_element_type=jnp.float32)
    h = jnp.maximum(h + b1, 0.0)
    # Layer 2.
    h = jnp.maximum(
        jnp.dot(h, w2, preferred_element_type=jnp.float32) + b2, 0.0)
    # Layer 3: produce a lane-dense (1, tb) row instead of a (tb, 1) column.
    ht = jnp.transpose(h)                                            # (H, tb)
    q = jnp.dot(w3, ht, preferred_element_type=jnp.float32) + b3     # (1, tb)
    out_ref[...] = q.reshape((1,) + q.shape).astype(out_ref.dtype)   # (1, 1, tb)


def q_forward(state, action, params, *, tb=None):
    """QFunction.forward: returns q values of shape [B]."""
    B, S = state.shape
    Ba, A = action.shape
    assert B == Ba
    w1, b1, w2, b2, w3, b3 = (params["w1"], params["b1"], params["w2"],
                              params["b2"], params["w3"], params["b3"])
    D, H = w1.shape
    assert D == S + A

    # ---- batch tiling: as few, as large grid steps as possible ---------------
    if tb is None:
        tb = min(_round_up(B, 8), 1024)
    else:
        tb = _round_up(min(tb, _round_up(B, 8)), 8)
    B_pad = _round_up(B, tb)
    if B_pad != B:
        state = jnp.pad(state, ((0, B_pad - B), (0, 0)))
        action = jnp.pad(action, ((0, B_pad - B), (0, 0)))
    G = B_pad // tb

    # ---- pack all parameters into one (P, H) slab (one DMA per step) ---------
    o_b1 = _round_up(D, 8)
    o_w2 = o_b1 + 8
    o_b2 = o_w2 + _round_up(H, 8)
    o_w3 = o_b2 + 8
    o_b3 = o_w3 + 8
    P = o_b3 + 8
    f32 = jnp.float32
    pk = jnp.zeros((P, H), f32)
    pk = pk.at[0:D, :].set(w1.astype(f32))
    pk = pk.at[o_b1, :].set(b1.reshape(-1).astype(f32))
    pk = pk.at[o_w2:o_w2 + H, :].set(w2.astype(f32))
    pk = pk.at[o_b2, :].set(b2.reshape(-1).astype(f32))
    pk = pk.at[o_w3, :].set(w3.reshape(-1).astype(f32))        # W3^T as a row
    pk = pk.at[o_b3, 0].set(b3.reshape(-1)[0].astype(f32))

    kernel = functools.partial(
        _q_kernel, S=S, A=A, H=H, offs=(o_b1, o_w2, o_b2, o_w3, o_b3))

    out = pl.pallas_call(
        kernel,
        out_shape=jax.ShapeDtypeStruct((G, 1, tb), jnp.float32),
        grid_spec=pltpu.PrefetchScalarGridSpec(
            num_scalar_prefetch=0,
            grid=(G,),
            in_specs=[
                pl.BlockSpec((tb, S), lambda i: (i, 0)),
                pl.BlockSpec((tb, A), lambda i: (i, 0)),
                pl.BlockSpec((P, H), lambda i: (0, 0)),
            ],
            out_specs=pl.BlockSpec((1, 1, tb), lambda i: (i, 0, 0)),
        ),
        compiler_params=pltpu.CompilerParams(
            dimension_semantics=("parallel",),
        ),
    )(state, action, pk)

    return out.reshape(-1)[:B]   # Squeeze(-1) + drop batch padding


def q_forward_reference(state, action, params):
    """Pure-JAX reference of the same math."""
    sa = jnp.concatenate([state, action], axis=1)
    h = jnp.maximum(sa @ params["w1"] + params["b1"], 0.0)
    h = jnp.maximum(h @ params["w2"] + params["b2"], 0.0)
    return (h @ params["w3"] + params["b3"]).reshape(-1)


def init_qfunction_params(key, state_dim, action_dim, hidden_dim):
    """PyTorch-Linear-like uniform fan-in init; weights stored [in, out]."""
    dims = [state_dim + action_dim, hidden_dim, hidden_dim, 1]
    p = {}
    k = key
    for li, (din, dout) in enumerate(zip(dims[:-1], dims[1:]), start=1):
        k, kw, kb = jax.random.split(k, 3)
        bound = 1.0 / (din ** 0.5)
        p[f"w{li}"] = jax.random.uniform(kw, (din, dout), jnp.float32, -bound, bound)
        p[f"b{li}"] = jax.random.uniform(kb, (dout,), jnp.float32, -bound, bound)
    return p


if __name__ == "__main__":
    # QFunction(state_dim=12, action_dim=4, hidden_dim=32, n_hidden=2).
    state_dim, action_dim, hidden_dim = 12, 4, 32
    key = jax.random.PRNGKey(0)
    k_params, k_state, k_action = jax.random.split(key, 3)
    params = init_qfunction_params(k_params, state_dim, action_dim, hidden_dim)

    # Case 1: whole batch in a single tile (B=16 -> one grid step).
    state = jax.random.normal(k_state, (16, state_dim), jnp.float32)
    action = jax.random.normal(k_action, (16, action_dim), jnp.float32)
    q = q_forward(state, action, params)
    jax.block_until_ready(q)
    ref = q_forward_reference(state, action, params)
    assert q.shape == (16,)
    assert jnp.allclose(q, ref, atol=1e-4, rtol=1e-4)

    # Case 2: multi-tile grid with batch padding (B=40, tb=16 -> G=3, pad=8).
    k_state2, k_action2 = jax.random.split(jax.random.PRNGKey(1))
    state2 = jax.random.normal(k_state2, (40, state_dim), jnp.float32)
    action2 = jax.random.normal(k_action2, (40, action_dim), jnp.float32)
    q2 = q_forward(state2, action2, params, tb=16)
    jax.block_until_ready(q2)
    ref2 = q_forward_reference(state2, action2, params)
    assert q2.shape == (40,)
    assert jnp.allclose(q2, ref2, atol=1e-4, rtol=1e-4)

    print("KERNEL_OK")
</pallas_src>

<mosaic_0001>
module attributes {stable_mosaic.version = 11 : i64} {
  func.func @_q_kernel(%arg0: i32, %arg1: memref<16x12xf32, #tpu.memory_space<vmem>>, %arg2: memref<16x4xf32, #tpu.memory_space<vmem>>, %arg3: memref<80x32xf32, #tpu.memory_space<vmem>>, %arg4: memref<1x1x16xf32, #tpu.memory_space<vmem>>) attributes {dimension_semantics = [#tpu.dimension_semantics<parallel>], iteration_bounds = array<i64: 1>, scalar_prefetch = 0 : i64, scratch_operands = 0 : i64, tpu.core_type = #tpu.core_type<tc>, window_params = [{transform_indices = @transform_0, window_bounds = array<i64: 16, 12>}, {transform_indices = @transform_1, window_bounds = array<i64: 16, 4>}, {pipeline_mode = #tpu.pipeline_mode<synchronous>, transform_indices = @transform_2, window_bounds = array<i64: 80, 32>}, {transform_indices = @transform_3, window_bounds = array<i64: 1, 1, 16>}]} {
    %c0 = arith.constant 0 : index
    %c0_0 = arith.constant 0 : index
    %0 = vector.load %arg1[%c0, %c0_0] : memref<16x12xf32, #tpu.memory_space<vmem>>, vector<16x12xf32>
    %c0_1 = arith.constant 0 : index
    %c0_2 = arith.constant 0 : index
    %1 = vector.load %arg2[%c0_1, %c0_2] : memref<16x4xf32, #tpu.memory_space<vmem>>, vector<16x4xf32>
    %c0_3 = arith.constant 0 : index
    %c0_4 = arith.constant 0 : index
    %2 = vector.load %arg3[%c0_3, %c0_4] : memref<80x32xf32, #tpu.memory_space<vmem>>, vector<12x32xf32>
    %c12 = arith.constant 12 : index
    %c0_5 = arith.constant 0 : index
    %3 = vector.load %arg3[%c12, %c0_5] : memref<80x32xf32, #tpu.memory_space<vmem>>, vector<4x32xf32>
    %c16 = arith.constant 16 : index
    %c0_6 = arith.constant 0 : index
    %4 = vector.load %arg3[%c16, %c0_6] : memref<80x32xf32, #tpu.memory_space<vmem>>, vector<1x32xf32>
    %c24 = arith.constant 24 : index
    %c0_7 = arith.constant 0 : index
    %5 = vector.load %arg3[%c24, %c0_7] : memref<80x32xf32, #tpu.memory_space<vmem>>, vector<32x32xf32>
    %c56 = arith.constant 56 : index
    %c0_8 = arith.constant 0 : index
    %6 = vector.load %arg3[%c56, %c0_8] : memref<80x32xf32, #tpu.memory_space<vmem>>, vector<1x32xf32>
    %c64 = arith.constant 64 : index
    %c0_9 = arith.constant 0 : index
    %7 = vector.load %arg3[%c64, %c0_9] : memref<80x32xf32, #tpu.memory_space<vmem>>, vector<1x32xf32>
    %c72 = arith.constant 72 : index
    %c0_10 = arith.constant 0 : index
    %8 = vector.load %arg3[%c72, %c0_10] : memref<80x32xf32, #tpu.memory_space<vmem>>, vector<1x1xf32>
    %cst = arith.constant dense<0.000000e+00> : vector<16x32xf32>
    %9 = tpu.matmul %0, %2, %cst {dimension_numbers = #tpu.dot_dimension_numbers<[1], [0], [0], [1], [0, 0, 1, 1], [], []>} : vector<16x12xf32>, vector<12x32xf32>, vector<16x32xf32> -> vector<16x32xf32>
    %cst_11 = arith.constant dense<0.000000e+00> : vector<16x32xf32>
    %10 = tpu.matmul %1, %3, %cst_11 {dimension_numbers = #tpu.dot_dimension_numbers<[1], [0], [0], [1], [0, 0, 1, 1], [], []>} : vector<16x4xf32>, vector<4x32xf32>, vector<16x32xf32> -> vector<16x32xf32>
    %11 = arith.addf %9, %10 : vector<16x32xf32>
    %12 = vector.broadcast %4 : vector<1x32xf32> to vector<16x32xf32>
    %13 = arith.addf %11, %12 : vector<16x32xf32>
    %cst_12 = arith.constant 0.000000e+00 : f32
    %14 = vector.broadcast %cst_12 : f32 to vector<16x32xf32>
    %15 = arith.maximumf %13, %14 : vector<16x32xf32>
    %cst_13 = arith.constant dense<0.000000e+00> : vector<16x32xf32>
    %16 = tpu.matmul %15, %5, %cst_13 {dimension_numbers = #tpu.dot_dimension_numbers<[1], [0], [0], [1], [0, 0, 1, 1], [], []>} : vector<16x32xf32>, vector<32x32xf32>, vector<16x32xf32> -> vector<16x32xf32>
    %17 = vector.broadcast %6 : vector<1x32xf32> to vector<16x32xf32>
    %18 = arith.addf %16, %17 : vector<16x32xf32>
    %cst_14 = arith.constant 0.000000e+00 : f32
    %19 = vector.broadcast %cst_14 : f32 to vector<16x32xf32>
    %20 = arith.maximumf %18, %19 : vector<16x32xf32>
    %21 = tpu.transpose %20, [1, 0] : vector<16x32xf32> -> vector<32x16xf32>
    %cst_15 = arith.constant dense<0.000000e+00> : vector<1x16xf32>
    %22 = tpu.matmul %7, %21, %cst_15 {dimension_numbers = #tpu.dot_dimension_numbers<[1], [0], [0], [1], [0, 0, 1, 1], [], []>} : vector<1x32xf32>, vector<32x16xf32>, vector<1x16xf32> -> vector<1x16xf32>
    %23 = vector.broadcast %8 : vector<1x1xf32> to vector<1x16xf32>
    %24 = arith.addf %22, %23 : vector<1x16xf32>
    %25 = vector.shape_cast %24 : vector<1x16xf32> to vector<1x1x16xf32>
    %c0_16 = arith.constant 0 : index
    %c0_17 = arith.constant 0 : index
    %c0_18 = arith.constant 0 : index
    %26 = vector.load %arg4[%c0_16, %c0_17, %c0_18] : memref<1x1x16xf32, #tpu.memory_space<vmem>>, vector<1x1x16xf32>
    tpu.vector_store %arg4[%c0_16, %c0_17, %c0_18], %25 {strides = array<i32>} : memref<1x1x16xf32, #tpu.memory_space<vmem>>, vector<1x1x16xf32>,
    return
  }
  func.func @transform_0(%arg0: i32) -> (i32, i32) {
    %c0_i32 = arith.constant 0 : i32
    %c0_i32_0 = arith.constant 0 : i32
    return %arg0, %c0_i32 : i32, i32
  }
  func.func @transform_1(%arg0: i32) -> (i32, i32) {
    %c0_i32 = arith.constant 0 : i32
    %c0_i32_0 = arith.constant 0 : i32
    return %arg0, %c0_i32 : i32, i32
  }
  func.func @transform_2(%arg0: i32) -> (i32, i32) {
    %c0_i32 = arith.constant 0 : i32
    %c0_i32_0 = arith.constant 0 : i32
    %c0_i32_1 = arith.constant 0 : i32
    return %c0_i32, %c0_i32_0 : i32, i32
  }
  func.func @transform_3(%arg0: i32) -> (i32, i32, i32) {
    %c0_i32 = arith.constant 0 : i32
    %c0_i32_0 = arith.constant 0 : i32
    %c0_i32_1 = arith.constant 0 : i32
    return %arg0, %c0_i32, %c0_i32_0 : i32, i32, i32
  }
}

</mosaic_0001>

<bundles_post_ra>
// kernel: tpu_custom_call.1
= control target key start
LH: loop header
LB: loop body
LE: loop exit
PB: predicated region body
PF: predicated region fallthrough
CT: control target
= control target key end

     0   :  { %vm37_vm0 = vcmask 1043456   ;;  %vm30_vm1 = vcmask 31744   ;;  %vm116_vm2 = vcmask 97280   ;;  %s560_s0 = inlined_call_operand.vmem [shape: f32[16,12], index: 0, kind: input, shape index: {}]   ;;  %s561_s1 = inlined_call_operand.vmem [shape: f32[16,4], index: 1, kind: input, shape index: {}]   ;;  %s562_s2 = inlined_call_operand.vmem [shape: f32[80,32], index: 2, kind: input, shape index: {}]   ;;  %s563_s3 = inlined_call_operand.hbm [shape: f32[1,1,16], index: 3, kind: output, shape index: {}]  }
   0x1   :  { %v21_v0 = vld [vmem:[%s562_s2 + $0xc] sm:$0xf]  ;;  %v20_v1 = vld [vmem:[%s562_s2 + $0x8] sm:$0xf]  ;;  %v17_v2 = vld [vmem:[%s561_s1] sm:$0xff] }
   0x2   :  { %426 = vmatprep.subr.msk.mxu0 %vm37_vm0, %v21_v0  ;;  %431 = vmatprep.subr.msk.mxu1 %vm37_vm0, %v20_v1  ;;  %v18_v3 = vld [vmem:[%s561_s1 + $0x8] sm:$0xff]  ;;  %v19_v4 = vld [vmem:[%s562_s2] sm:$0xff] }
   0x3   :  { %v15_v5 = vld [vmem:[%s560_s0] sm:$0xff]  ;;  %427 = vmatpush3.msk.msra.mxu0 %vm37_vm0, %v21_v0  ;;  %428 = vmatprep.mubr.msk.f32.mxu0 %vm30_vm1, %v17_v2 }
   0x4   :  { %8 = vsyncpa [#allocation3], 0  ;;  %432 = vmatpush3.msk.msra.mxu1 %vm37_vm0, %v20_v1  ;;  %429 = vmatmul.mubr.msk.f32.vlgmr.msra.gmra.mxu0 %vm30_vm1, %v18_v3  ;;  %v16_v6 = vld [vmem:[%s560_s0 + $0x8] sm:$0xff]  ;;  %v26_v7 = vld [vmem:[%s562_s2 + $0x30] sm:$0xff]  ;;  %vm213_vm3 = vcmask 261120   ;;  %v483_v22 = vmov 0.0  }
   0x5   :  { %433 = vmatprep.subr.mxu1 %v19_v4  ;;  %435 = vmatprep.mubr.msk.f32.mxu1 %vm116_vm2, %v15_v5  ;;  %v25_v8 = vld [vmem:[%s562_s2 + $0x28] sm:$0xff]  ;;  %v24_v9 = vld [vmem:[%s562_s2 + $0x20] sm:$0xff]  ;;  %v23_v10 = vld [vmem:[%s562_s2 + $0x18] sm:$0xff]  ;;  %vm484_vm4 = vmmov 0   ;;  %v485_v24 = vmov 0   ;;  %s486_s13 = smov [#allocation2]  }
   0x6   :  { %434 = vmatpush3.msra.mxu1 %v19_v4  ;;  %438 = vmatprep.subr.mxu0 %v26_v7  ;;  %v403_v13 = vld [vmem:[%s562_s2 + $0x10] ss:$0 sm:$0xff]  ;;  %v29_v23 = vld [vmem:[%s562_s2 + $0x48] sm:$0x1]  ;;  %v404_v25 = vld [vmem:[%s562_s2 + $0x38] ss:$0 sm:$0xff] }
   0x7   :  { %436 = vmatmul.mubr.msk.f32.vlgmr.msra.gmra.mxu1 %vm116_vm2, %v16_v6  ;;  %439 = vmatpush3.msra.mxu0 %v26_v7  ;;  %v28_v32 = vld [vmem:[%s562_s2 + $0x40] sm:$0x1]  ;;  %s389_s14 = sshll.u32 %s486_s13, 4  ;;  %vm381_vm5 = vcmask 122880   ;;  %s390_s14 = int_to_ptr.vmem [resolvable:$true] %s389_s14 }
   0x8   :  { %440 = vmatprep.subr.mxu0 %v25_v8  ;;  %449 = vmatprep.subr.mxu1 %v483_v22  ;;  %s461_s15 = scalar_lea.vmem %s390_s14, 16  ;;  %s465_s16 = scalar_lea.vmem %s390_s14, 32 }
   0x9   :  { %441 = vmatpush3.msra.mxu0 %v25_v8  ;;  %453 = vmatprep.mubr.msk.f32.mxu1 %vm484_vm4, %v483_v22  ;;  %p462_p0 = scmp.ne.s32.totalorder %s390_s14, %s461_s15  ;;  %p466_p1 = scmp.lt.s32.totalorder %s390_s14, %s390_s14 }
   0xa   :  { %442 = vmatprep.subr.mxu0 %v24_v9  ;;  %460 = vset.pattern.permute.xlu0 %v485_v24  ;;  %p467_p2 = scmp.lt.s32.totalorder %s465_s16, %s461_s15 }
   0xb   :  { %443 = vmatpush3.msra.mxu0 %v24_v9  ;;  %299 = vperm.xlu0 %460, %v29_v23  }
   0xc   :  { %444 = vmatprep.subr.mxu0 %v23_v10  ;;  %p468_p3 = por %p467_p2, %p466_p1 }
   0xd   :  { %445 = vmatpush3.msra.mxu0 %v23_v10 }
   0xe   :  { %p469_p4 = pnand %p468_p3, %p462_p0 }
  0x86   :  { %v300_v33 = vpop.permute.xlu0 %299 }
  0xc4   :  { %v430_v11 = vpop.f32.mrf.mxu0 }
  0xc6   :  { %v107_v15 = vpop.f32.mrf.mxu0 }
  0xc7   :  { %v437_v12 = vpop.f32.mrf.mxu1 }
  0xc8   :  { %v198_v14 = vadd.f32 %v437_v12, %v430_v11 }
  0xc9   :  { %v192_v16 = vpop.f32.mrf.mxu1 }
  0xca   :  { %v193_v17 = vadd.f32 %v192_v16, %v107_v15  ;;  %v206_v18 = vadd.f32 %v403_v13, %v198_v14 }
  0xcc   :  { %v205_v19 = vadd.f32 %v403_v13, %v193_v17  ;;  %v208_v21 = vmax.f32 %v206_v18, 0.0 }
  0xce   :  { %v207_v20 = vmax.f32 %v205_v19, 0.0 }
  0xd0   :  { %446 = vmatprep.mubr.msk.f32.mxu0 %vm213_vm3, %v207_v20 }
  0xd1   :  { %447 = vmatmul.mubr.msk.f32.vlgmr.msra.gmra.mxu0 %vm213_vm3, %v208_v21 }
 0x191   :  { %v448_v26 = vpop.f32.mrf.mxu0 }
 0x192   :  { %v292_v27 = vadd.f32 %v448_v26, %v404_v25 }
 0x193   :  { %v286_v28 = vpop.f32.mrf.mxu0 }
 0x194   :  { %v296_v29 = vmax.f32 %v292_v27, 0.0  ;;  %v287_v30 = vadd.f32 %v404_v25, %v286_v28 }
 0x196   :  { %450 = vmatpush3.xpose.msk.msra.mxu1 %vm213_vm3, %v296_v29  ;;  %v295_v31 = vmax.f32 %v287_v30, 0.0 }
 0x197   :  { %451 = vmatprep.subr.mxu1 %v483_v22 }
 0x19a   :  { %452 = vmatpush3.xpose.msk.msra.mxu1 %vm213_vm3, %v295_v31 }
 0x19d   :  { %454 = vmatmul.mubr.msk.f32.vlgmr.msra.gmra.mxu1 %vm213_vm3, %v28_v32 }
 0x25d   :  { %v377_v34 = vpop.f32.mrf.mxu1 }
 0x25e   :  { %v378_v35 = vadd.f32 %v377_v34, %v300_v33 }
 0x25f   :  { %v455_v36 = vpop.f32.mrf.mxu1 }
 0x260   :  { %382 = vst.msk [vmem:[#allocation2] sm:$0x1] %vm381_vm5, %v378_v35 }
 0x261   :  { %472 = shalt.err (!%p469_p4)
}
 0x262   :  { %392 = dma.vmem_to_hbm [thread:$0]  %s390_s14, 16, %s563_s3, [#allocation3]  }
 0x263   :  { %481 = dma.done.wait [#allocation3], 16  }
 0x264   :  { %482 = vsyncadd [#allocation3], 4294967280 }
 0x265   :  { %396 = vsyncpa [#allocation3], 1 }

</bundles_post_ra>
